<compile_context>
chip_gen: v7x
topology: tpu7x:2x2x1
jax: 0.10.0
libtpu: 0.0.40
codegen_flags: <defaults>
</compile_context>

<pallas_src>
import math
import jax
import jax.numpy as jnp
from jax.experimental import pallas as pl
from jax.experimental.pallas import tpu as pltpu

# ----------------------------- model dims -----------------------------------
INPUT_DIM = 10
OUTPUT_DIM = 5
BAYES_DIM = 4      # bayesian embedding dim E
H1 = 16            # encoder hidden size
BATCH = 8

LANES = 128
MEAN_OFF = H1                  # mean lives in output lanes [16, 21)
SIG_OFF = H1 + OUTPUT_DIM      # sigma lives in output lanes [21, 26)

# rows inside the packed "rest" parameter slab (144 x 128)
ROW_WEMB = LANES               # 128..131: emb part of fused head
ROW_B_R = 136                  # folded b_ir + b_hr      (lanes 0..15)
ROW_B_Z = 137                  # folded b_iz + b_hz      (lanes 0..15)
ROW_B_N = 138                  # b_in                    (lanes 0..15)
ROW_B_HN = 139                 # b_hn (multiplied by r)  (lanes 0..15)
ROW_B_HEAD = 140               # head bias (mu @16..20, sigma @21..25)
P_ROWS = 144


# ----------------------------- Pallas kernel --------------------------------
def blue_mi_kernel(x_ref, emb_ref, wih_ref, p_ref, out_ref):
    """Fused GRU-cell encoder + fused mu/sigma heads, lane-dense output slab."""
    x = x_ref[...]                      # (B, INPUT_DIM)
    emb = emb_ref[...]                  # (B, E)
    w_ih = wih_ref[...]                 # (INPUT_DIM, 3*128)
    p = p_ref[...]                      # (144, 128)

    # --- GRU cell, h0 = 0 ----------------------------------------------------
    # gi[:, g*128 : g*128+H1] holds gate g's pre-activation; other lanes are 0.
    gi = jnp.dot(x, w_ih, preferred_element_type=jnp.float32)     # (B, 384)
    g_r = gi[:, 0 * LANES:1 * LANES]    # full-vreg, lane-aligned slices
    g_z = gi[:, 1 * LANES:2 * LANES]
    g_n = gi[:, 2 * LANES:3 * LANES]

    b_r = p[ROW_B_R:ROW_B_R + 1, :]     # (1, 128) biases, values in lanes 0..15
    b_z = p[ROW_B_Z:ROW_B_Z + 1, :]
    b_n = p[ROW_B_N:ROW_B_N + 1, :]
    b_hn = p[ROW_B_HN:ROW_B_HN + 1, :]

    r = jax.nn.sigmoid(g_r + b_r)
    zg = jax.nn.sigmoid(g_z + b_z)
    n = jnp.tanh(g_n + b_n + r * b_hn)
    # padding lanes (>= H1) are exactly 0:  (1-0.5)*tanh(0) == 0
    z = (1.0 - zg) * n                  # (B, 128): hidden state in lanes 0..15

    # --- fused mu|sigma heads (no concat: z @ W_z + emb @ W_emb) --------------
    w_head = p[0:LANES, :]                          # (128, 128), z rows 0..15
    w_emb = p[ROW_WEMB:ROW_WEMB + BAYES_DIM, :]     # (E, 128)
    b_head = p[ROW_B_HEAD:ROW_B_HEAD + 1, :]        # (1, 128)

    head = (jnp.dot(z, w_head, preferred_element_type=jnp.float32)
            + jnp.dot(emb, w_emb, preferred_element_type=jnp.float32)
            + b_head)                   # nonzero only in lanes 16..25

    # head lanes 0..15 are exactly 0 and z lanes 16..127 are exactly 0,
    # so a single add assembles the lane-dense output slab.
    out = head + z

    lane = jax.lax.broadcasted_iota(jnp.int32, out.shape, 1)
    sig_mask = (lane >= SIG_OFF) & (lane < SIG_OFF + OUTPUT_DIM)
    out_ref[...] = jnp.where(sig_mask, jnp.exp(out), out)


# ----------------------------- param packing (one-time, host side) -----------
def pack_params(p):
    """Pack PyTorch-layout parameters into two kernel-friendly slabs."""
    w_ih, b_ih, b_hh = p["w_ih"], p["b_ih"], p["b_hh"]
    w_mu, b_mu = p["w_mu"], p["b_mu"]
    w_sg, b_sg = p["w_sigma"], p["b_sigma"]

    # GRU input weights: one 128-lane segment per gate -> gate slices are whole vregs.
    wih_pad = jnp.zeros((INPUT_DIM, 3 * LANES), jnp.float32)
    for g in range(3):
        wih_pad = wih_pad.at[:, g * LANES:g * LANES + H1].set(
            w_ih[g * H1:(g + 1) * H1, :].T)

    rest = jnp.zeros((P_ROWS, LANES), jnp.float32)
    # z-part of the fused mu|sigma head (output lanes 16..20 / 21..25).
    rest = rest.at[0:H1, MEAN_OFF:MEAN_OFF + OUTPUT_DIM].set(w_mu[:, 0:H1].T)
    rest = rest.at[0:H1, SIG_OFF:SIG_OFF + OUTPUT_DIM].set(w_sg[:, 0:H1].T)
    # emb-part of the fused head.
    rest = rest.at[ROW_WEMB:ROW_WEMB + BAYES_DIM,
                   MEAN_OFF:MEAN_OFF + OUTPUT_DIM].set(w_mu[:, H1:].T)
    rest = rest.at[ROW_WEMB:ROW_WEMB + BAYES_DIM,
                   SIG_OFF:SIG_OFF + OUTPUT_DIM].set(w_sg[:, H1:].T)
    # GRU biases.  h0 == 0  =>  b_hr / b_hz fold into the input biases.
    rest = rest.at[ROW_B_R, 0:H1].set(b_ih[0:H1] + b_hh[0:H1])
    rest = rest.at[ROW_B_Z, 0:H1].set(b_ih[H1:2 * H1] + b_hh[H1:2 * H1])
    rest = rest.at[ROW_B_N, 0:H1].set(b_ih[2 * H1:3 * H1])
    rest = rest.at[ROW_B_HN, 0:H1].set(b_hh[2 * H1:3 * H1])
    # Head biases.
    rest = rest.at[ROW_B_HEAD, MEAN_OFF:MEAN_OFF + OUTPUT_DIM].set(b_mu)
    rest = rest.at[ROW_B_HEAD, SIG_OFF:SIG_OFF + OUTPUT_DIM].set(b_sg)
    return wih_pad, rest


# ----------------------------- wrapper ---------------------------------------
@jax.jit
def blue_mi_gaussian(x, emb, packed):
    """packed = pack_params(params) (precomputed once, outside the hot path)."""
    wih_pad, rest = packed
    B = x.shape[0]
    full = lambda shape: pl.BlockSpec(shape, lambda: tuple(0 for _ in shape))

    out = pl.pallas_call(
        blue_mi_kernel,
        out_shape=jax.ShapeDtypeStruct((B, LANES), jnp.float32),
        grid_spec=pltpu.PrefetchScalarGridSpec(
            num_scalar_prefetch=0,
            grid=(),
            in_specs=[
                full(x.shape),
                full(emb.shape),
                full(wih_pad.shape),
                full(rest.shape),
            ],
            out_specs=full((B, LANES)),
        ),
    )(x, emb, wih_pad, rest)

    z = out[:, 0:H1]
    mean = out[:, MEAN_OFF:MEAN_OFF + OUTPUT_DIM]
    sigma = out[:, SIG_OFF:SIG_OFF + OUTPUT_DIM]
    return (mean, sigma), z


# ----------------------------- parameter init ---------------------------------
def init_params(key):
    """Deterministic parameter init mirroring the PyTorch __init__."""
    keys = jax.random.split(key, 4)
    net_in = H1 + BAYES_DIM

    # GRU input-hidden weights: PyTorch default uniform(-1/sqrt(H1), 1/sqrt(H1))
    k = 1.0 / math.sqrt(H1)
    w_ih = jax.random.uniform(keys[0], (3 * H1, INPUT_DIM), jnp.float32, -k, k)
    b_ih = jax.random.uniform(keys[1], (3 * H1,), jnp.float32, -k, k)
    b_hh = jax.random.uniform(keys[2], (3 * H1,), jnp.float32, -k, k)

    # mu / sigma heads: xavier_normal_ weights, zero bias
    std = math.sqrt(2.0 / (net_in + OUTPUT_DIM))
    kmu, ksig = jax.random.split(keys[3])
    w_mu = std * jax.random.normal(kmu, (OUTPUT_DIM, net_in), jnp.float32)
    b_mu = jnp.zeros((OUTPUT_DIM,), jnp.float32)
    w_sigma = std * jax.random.normal(ksig, (OUTPUT_DIM, net_in), jnp.float32)
    b_sigma = jnp.zeros((OUTPUT_DIM,), jnp.float32)

    return dict(w_ih=w_ih, b_ih=b_ih, b_hh=b_hh,
                w_mu=w_mu, b_mu=b_mu, w_sigma=w_sigma, b_sigma=b_sigma)


# ----------------------------- pure-JAX reference ------------------------------
def reference(x, emb, p):
    gi = x @ p["w_ih"].T + p["b_ih"]
    i_r, i_z, i_n = jnp.split(gi, 3, axis=1)
    b_hr, b_hz, b_hn = jnp.split(p["b_hh"], 3)
    r = jax.nn.sigmoid(i_r + b_hr)
    zg = jax.nn.sigmoid(i_z + b_hz)
    n = jnp.tanh(i_n + r * b_hn)
    z = (1.0 - zg) * n
    ins = jnp.concatenate([z, emb], axis=1)
    mean = ins @ p["w_mu"].T + p["b_mu"]
    sigma = jnp.exp(ins @ p["w_sigma"].T + p["b_sigma"])
    return (mean, sigma), z


if __name__ == "__main__":
    key = jax.random.PRNGKey(0)
    kx, ke, kp = jax.random.split(key, 3)

    x = jax.random.normal(kx, (BATCH, INPUT_DIM), jnp.float32)
    emb = jax.random.normal(ke, (BATCH, BAYES_DIM), jnp.float32)
    params = init_params(kp)
    packed = pack_params(params)        # one-time packing, hoisted out of the hot path

    (mean, sigma), z = blue_mi_gaussian(x, emb, packed)
    jax.block_until_ready((mean, sigma, z))

    (mean_r, sigma_r), z_r = reference(x, emb, params)
    assert jnp.allclose(mean, mean_r, atol=1e-5), "mean mismatch"
    assert jnp.allclose(sigma, sigma_r, atol=1e-5), "sigma mismatch"
    assert jnp.allclose(z, z_r, atol=1e-5), "z mismatch"

    print("KERNEL_OK")
</pallas_src>

<mosaic_0001>
module attributes {stable_mosaic.version = 11 : i64} {
  func.func @blue_mi_kernel(%arg0: memref<8x10xf32, #tpu.memory_space<vmem>>, %arg1: memref<8x4xf32, #tpu.memory_space<vmem>>, %arg2: memref<10x384xf32, #tpu.memory_space<vmem>>, %arg3: memref<144x128xf32, #tpu.memory_space<vmem>>, %arg4: memref<8x128xf32, #tpu.memory_space<vmem>>) attributes {dimension_semantics = [], scalar_prefetch = 0 : i64, scratch_operands = 0 : i64, tpu.core_type = #tpu.core_type<tc>} {
    %c0 = arith.constant 0 : index
    %c0_0 = arith.constant 0 : index
    %0 = vector.load %arg0[%c0, %c0_0] : memref<8x10xf32, #tpu.memory_space<vmem>>, vector<8x10xf32>
    %c0_1 = arith.constant 0 : index
    %c0_2 = arith.constant 0 : index
    %1 = vector.load %arg1[%c0_1, %c0_2] : memref<8x4xf32, #tpu.memory_space<vmem>>, vector<8x4xf32>
    %c0_3 = arith.constant 0 : index
    %c0_4 = arith.constant 0 : index
    %2 = vector.load %arg2[%c0_3, %c0_4] : memref<10x384xf32, #tpu.memory_space<vmem>>, vector<10x384xf32>
    %c0_5 = arith.constant 0 : index
    %c0_6 = arith.constant 0 : index
    %3 = vector.load %arg3[%c0_5, %c0_6] : memref<144x128xf32, #tpu.memory_space<vmem>>, vector<144x128xf32>
    %cst = arith.constant dense<0.000000e+00> : vector<8x384xf32>
    %4 = tpu.matmul %0, %2, %cst {dimension_numbers = #tpu.dot_dimension_numbers<[1], [0], [0], [1], [0, 0, 1, 1], [], []>} : vector<8x10xf32>, vector<10x384xf32>, vector<8x384xf32> -> vector<8x384xf32>
    %5 = vector.extract_strided_slice %4 {offsets = [0, 0], sizes = [8, 128], strides = [1, 1]} : vector<8x384xf32> to vector<8x128xf32>
    %6 = vector.extract_strided_slice %4 {offsets = [0, 128], sizes = [8, 128], strides = [1, 1]} : vector<8x384xf32> to vector<8x128xf32>
    %7 = vector.extract_strided_slice %4 {offsets = [0, 256], sizes = [8, 128], strides = [1, 1]} : vector<8x384xf32> to vector<8x128xf32>
    %8 = vector.extract_strided_slice %3 {offsets = [136, 0], sizes = [1, 128], strides = [1, 1]} : vector<144x128xf32> to vector<1x128xf32>
    %9 = vector.extract_strided_slice %3 {offsets = [137, 0], sizes = [1, 128], strides = [1, 1]} : vector<144x128xf32> to vector<1x128xf32>
    %10 = vector.extract_strided_slice %3 {offsets = [138, 0], sizes = [1, 128], strides = [1, 1]} : vector<144x128xf32> to vector<1x128xf32>
    %11 = vector.extract_strided_slice %3 {offsets = [139, 0], sizes = [1, 128], strides = [1, 1]} : vector<144x128xf32> to vector<1x128xf32>
    %12 = vector.broadcast %8 : vector<1x128xf32> to vector<8x128xf32>
    %13 = arith.addf %5, %12 : vector<8x128xf32>
    %14 = arith.negf %13 : vector<8x128xf32>
    %15 = math.exp %14 : vector<8x128xf32>
    %cst_7 = arith.constant 1.000000e+00 : f32
    %16 = vector.broadcast %cst_7 : f32 to vector<8x128xf32>
    %17 = arith.addf %16, %15 : vector<8x128xf32>
    %18 = arith.divf %16, %17 : vector<8x128xf32>
    %19 = vector.broadcast %9 : vector<1x128xf32> to vector<8x128xf32>
    %20 = arith.addf %6, %19 : vector<8x128xf32>
    %21 = arith.negf %20 : vector<8x128xf32>
    %22 = math.exp %21 : vector<8x128xf32>
    %cst_8 = arith.constant 1.000000e+00 : f32
    %23 = vector.broadcast %cst_8 : f32 to vector<8x128xf32>
    %24 = arith.addf %23, %22 : vector<8x128xf32>
    %25 = arith.divf %23, %24 : vector<8x128xf32>
    %26 = vector.broadcast %10 : vector<1x128xf32> to vector<8x128xf32>
    %27 = arith.addf %7, %26 : vector<8x128xf32>
    %28 = vector.broadcast %11 : vector<1x128xf32> to vector<8x128xf32>
    %29 = arith.mulf %18, %28 : vector<8x128xf32>
    %30 = arith.addf %27, %29 : vector<8x128xf32>
    %31 = math.tanh %30 : vector<8x128xf32>
    %cst_9 = arith.constant 1.000000e+00 : f32
    %32 = vector.broadcast %cst_9 : f32 to vector<8x128xf32>
    %33 = arith.subf %32, %25 : vector<8x128xf32>
    %34 = arith.mulf %33, %31 : vector<8x128xf32>
    %35 = vector.extract_strided_slice %3 {offsets = [0, 0], sizes = [128, 128], strides = [1, 1]} : vector<144x128xf32> to vector<128x128xf32>
    %36 = vector.extract_strided_slice %3 {offsets = [128, 0], sizes = [4, 128], strides = [1, 1]} : vector<144x128xf32> to vector<4x128xf32>
    %37 = vector.extract_strided_slice %3 {offsets = [140, 0], sizes = [1, 128], strides = [1, 1]} : vector<144x128xf32> to vector<1x128xf32>
    %cst_10 = arith.constant dense<0.000000e+00> : vector<8x128xf32>
    %38 = tpu.matmul %34, %35, %cst_10 {dimension_numbers = #tpu.dot_dimension_numbers<[1], [0], [0], [1], [0, 0, 1, 1], [], []>} : vector<8x128xf32>, vector<128x128xf32>, vector<8x128xf32> -> vector<8x128xf32>
    %cst_11 = arith.constant dense<0.000000e+00> : vector<8x128xf32>
    %39 = tpu.matmul %1, %36, %cst_11 {dimension_numbers = #tpu.dot_dimension_numbers<[1], [0], [0], [1], [0, 0, 1, 1], [], []>} : vector<8x4xf32>, vector<4x128xf32>, vector<8x128xf32> -> vector<8x128xf32>
    %40 = arith.addf %38, %39 : vector<8x128xf32>
    %41 = vector.broadcast %37 : vector<1x128xf32> to vector<8x128xf32>
    %42 = arith.addf %40, %41 : vector<8x128xf32>
    %43 = arith.addf %42, %34 : vector<8x128xf32>
    %44 = tpu.iota {dimensions = array<i32: 1>} : vector<8x128xi32>
    %c21_i32 = arith.constant 21 : i32
    %45 = vector.broadcast %c21_i32 : i32 to vector<8x128xi32>
    %46 = arith.cmpi sge, %44, %45 : vector<8x128xi32>
    %c26_i32 = arith.constant 26 : i32
    %47 = vector.broadcast %c26_i32 : i32 to vector<8x128xi32>
    %48 = arith.cmpi slt, %44, %47 : vector<8x128xi32>
    %49 = arith.andi %46, %48 : vector<8x128xi1>
    %50 = math.exp %43 : vector<8x128xf32>
    %51 = arith.select %49, %50, %43 : vector<8x128xi1>, vector<8x128xf32>
    %c0_12 = arith.constant 0 : index
    %c0_13 = arith.constant 0 : index
    %52 = vector.load %arg4[%c0_12, %c0_13] : memref<8x128xf32, #tpu.memory_space<vmem>>, vector<8x128xf32>
    tpu.vector_store %arg4[%c0_12, %c0_13], %51 {strides = array<i32>} : memref<8x128xf32, #tpu.memory_space<vmem>>, vector<8x128xf32>,
    return
  }
}

</mosaic_0001>

<bundles_post_ra>
// kernel: blue_mi_gaussian.1
= control target key start
LH: loop header
LB: loop body
LE: loop exit
PB: predicated region body
PF: predicated region fallthrough
CT: control target
= control target key end

     0   :  { %9 = vsyncpa [#allocation3], 0  ;;  %s703_s0 = inlined_call_operand.vmem [shape: f32[8,10], index: 0, kind: input, shape index: {}]   ;;  %s704_s1 = inlined_call_operand.vmem [shape: f32[8,4], index: 1, kind: input, shape index: {}]   ;;  %s705_s2 = inlined_call_operand.hbm [shape: f32[10,384], index: 2, kind: input, shape index: {}]   ;;  %s706_s3 = inlined_call_operand.hbm [shape: f32[144,128], index: 3, kind: input, shape index: {}]   ;;  %s707_s4 = inlined_call_operand.vmem [shape: f32[8,128], index: 4, kind: output, shape index: {}]  }
   0x1   :  { %10 = vsyncpa [#allocation5], 0  ;;  %s613_s15 = smov [#allocation2]   ;;  %s565_s19 = scalar_lea.hbm %s705_s2, 768 }
   0x2   :  { %s20_s16 = sshll.u32 %s613_s15, 4  ;;  %p566_p0 = scmp.ne.s32.totalorder %s705_s2, %s565_s19  ;;  %s21_s16 = int_to_ptr.vmem [resolvable:$true] %s20_s16 }
   0x3   :  { %p569_p1 = scmp.lt.u32.totalorder %s565_s19, %s705_s2 }
   0x5   :  { %p571_p2 = pnand %p569_p1, %p566_p0 }
   0x7   :  { %574 = shalt.err (!%p571_p2)
}
   0x8   :  { %s575_s24 = scalar_lea.vmem %s21_s16, 768  ;;  %p580_p4 = scmp.lt.s32.totalorder %s21_s16, %s21_s16 }
   0x9   :  { %p576_p3 = scmp.ne.s32.totalorder %s21_s16, %s575_s24  ;;  %p581_p5 = scmp.lt.s32.totalorder %s575_s24, %s575_s24 }
   0xb   :  { %p582_p6 = por %p581_p5, %p580_p4 }
   0xd   :  { %p583_p7 = pnand %p582_p6, %p576_p3 }
   0xf   :  { %586 = shalt.err (!%p583_p7)
}
  0x10   :  { %s614_s25 = smov 384   ;;  %s615_s26 = smov 24  }
  0x11   :  { %26 = dma.hbm_to_vmem [thread:$0]  %s705_s2, 768, %s21_s16, [#allocation3], %s614_s25, %s614_s25, %s615_s26  }
  0x12   :  { %s616_s29 = smov [#allocation4]   ;;  %s587_s7 = scalar_lea.hbm %s706_s3, 2304 }
  0x13   :  { %s32_s30 = sshll.u32 %s616_s29, 4  ;;  %p588_p8 = scmp.ne.s32.totalorder %s706_s3, %s587_s7  ;;  %s33_s30 = int_to_ptr.vmem [resolvable:$true] %s32_s30 }
  0x14   :  { %p591_p9 = scmp.lt.u32.totalorder %s587_s7, %s706_s3 }
  0x16   :  { %p593_p10 = pnand %p591_p9, %p588_p8 }
  0x18   :  { %596 = shalt.err (!%p593_p10)
}
  0x19   :  { %s597_s12 = scalar_lea.vmem %s33_s30, 2304  ;;  %p602_p12 = scmp.lt.s32.totalorder %s33_s30, %s33_s30 }
  0x1a   :  { %p598_p11 = scmp.ne.s32.totalorder %s33_s30, %s597_s12  ;;  %p603_p13 = scmp.lt.s32.totalorder %s597_s12, %s597_s12 }
  0x1c   :  { %p604_p0 = por %p603_p13, %p602_p12 }
  0x1e   :  { %p605_p1 = pnand %p604_p0, %p598_p11 }
  0x20   :  { %608 = shalt.err (!%p605_p1)
}
  0x21   :  { %s617_s2 = smov 128   ;;  %s618_s13 = smov 8  }
  0x22   :  { %38 = dma.hbm_to_vmem [thread:$0]  %s706_s3, 2304, %s33_s30, [#allocation5], %s617_s2, %s617_s2, %s618_s13  }
  0x23   :  { %609 = dma.done.wait [#allocation3], 768  }
  0x24   :  { %610 = vsyncadd [#allocation3], 4294966528 }
  0x25   :  { %611 = dma.done.wait [#allocation5], 2304  }
  0x26   :  { %612 = vsyncadd [#allocation5], 4294964992  ;;  %v619_v0 = vmov 0.0   ;;  %v620_v1 = vmov 0.0|0.0   ;;  %vm621_vm0 = vmmov 0   ;;  %vm75_vm1 = vcmask 1041408  }
  0x27   :  { %149 = vmatprep.mubr.f32.mxu0 %v619_v0  ;;  %519 = vmatprep.subr.bf16.mxu1 %v620_v1  ;;  %vm622_vm2 = vmmov 1   ;;  %v48_v3 = vld [vmem:[#allocation2 + $0x8] sm:$0xff]  ;;  %v51_v4 = vld [vmem:[#allocation2 + $0x20] sm:$0x3]  ;;  %v50_v7 = vld [vmem:[#allocation2 + $0x18] sm:$0x3]  ;;  %v226_v39 = vlaneseq }
  0x28   :  { %506 = vmatprep.mubr.msk.f32.mxu1 %vm621_vm0, %v619_v0  ;;  %vm674_vm3 = vmpackc.low %vm75_vm1, %vm622_vm2  ;;  %v47_v5 = vld [vmem:[#allocation2] sm:$0xff]  ;;  %v509_v6 = vpack.c.bf16 %v51_v4, %v48_v3  ;;  %v49_v8 = vld [vmem:[#allocation2 + $0x10] sm:$0xff]  ;;  %vm71_vm4 = vcmask 80896   ;;  %vm266_vm5 = vcmask 1043456   ;;  %vm262_vm6 = vcmask 31744  }
  0x29   :  { %v512_v9 = vpack.c.bf16 %v50_v7, %v47_v5  ;;  %v52_v10 = vld [vmem:[#allocation2 + $0x28] sm:$0x3]  ;;  %v45_v11 = vld [vmem:[%s703_s0] sm:$0xff]  ;;  %v53_v13 = vld [vmem:[#allocation4] sm:$0xff]  ;;  %v227_v40 = vshrl.u32 %v226_v39, 7 }
  0x2a   :  { %511 = vmatprep.subr.msk.bf16.mxu0 %vm674_vm3, %v509_v6  ;;  %v516_v12 = vpack.c.bf16 %v52_v10, %v49_v8  ;;  %v54_v14 = vld [vmem:[#allocation4 + $0x8] sm:$0xff]  ;;  %v55_v16 = vld [vmem:[#allocation4 + $0x10] sm:$0xff]  ;;  %v56_v17 = vld [vmem:[#allocation4 + $0x18] sm:$0xff] }
  0x2b   :  { %514 = vmatpush1.bf16.msk.msra.mxu0 %vm674_vm3, %v512_v9  ;;  %v520_v15 = vpack.c.bf16 %v54_v14, %v53_v13  ;;  %v523_v18 = vpack.c.bf16 %v56_v17, %v55_v16  ;;  %v57_v19 = vld [vmem:[#allocation4 + $0x20] sm:$0xff]  ;;  %v58_v20 = vld [vmem:[#allocation4 + $0x28] sm:$0xff]  ;;  %v59_v22 = vld [vmem:[#allocation4 + $0x30] sm:$0xff]  ;;  %v228_v41 = vsub.s32 0, %v227_v40  ;;  %v239_v43 = vsub.s32 1, %v227_v40 }
  0x2c   :  { %515 = vmatprep.subr.bf16.mxu0 %v620_v1  ;;  %v526_v21 = vpack.c.bf16 %v58_v20, %v57_v19  ;;  %v60_v23 = vld [vmem:[#allocation4 + $0x38] sm:$0xff]  ;;  %v61_v25 = vld [vmem:[#allocation4 + $0x40] sm:$0xff]  ;;  %v62_v26 = vld [vmem:[#allocation4 + $0x48] sm:$0xff]  ;;  %v250_v56 = vsub.s32 2, %v227_v40  ;;  %v255_v57 = vsub.s32 3, %v227_v40  ;;  %v412_v8 = vsub.s32 4, %v227_v40 }
  0x2d   :  { %521 = vmatpush3.bf16.msra.mxu1 %v520_v15  ;;  %v529_v24 = vpack.c.bf16 %v60_v23, %v59_v22  ;;  %v532_v27 = vpack.c.bf16 %v62_v26, %v61_v25  ;;  %v63_v28 = vld [vmem:[#allocation4 + $0x50] sm:$0xff]  ;;  %v64_v29 = vld [vmem:[#allocation4 + $0x58] sm:$0xff]  ;;  %v65_v31 = vld [vmem:[#allocation4 + $0x60] sm:$0xff]  ;;  %v417_v16 = vand.u32 127, %v226_v39 }
  0x2e   :  { %433 = vmatmul.mubr.msk.f32.vlgmr.msra.gmra.mrb[0].mxu0 %vm71_vm4, %v45_v11  ;;  %522 = vmatprep.subr.bf16.mxu1 %v620_v1  ;;  %v535_v30 = vpack.c.bf16 %v64_v29, %v63_v28  ;;  %v66_v32 = vld [vmem:[#allocation4 + $0x68] sm:$0xff]  ;;  %v69_v33 = vld [vmem:[#allocation4 + $0x80] sm:$0xff]  ;;  %v46_v34 = vld [vmem:[%s704_s1] sm:$0xff] }
  0x2f   :  { %518 = vmatpush3.bf16.msk.msra.mxu0 %vm674_vm3, %v516_v12  ;;  %466 = vmatprep.mubr.msk.f32.mxu0 %vm621_vm0, %v619_v0  ;;  %v538_v35 = vpack.c.bf16 %v66_v32, %v65_v31  ;;  %v67_v36 = vld [vmem:[#allocation4 + $0x70] sm:$0xff]  ;;  %v68_v37 = vld [vmem:[#allocation4 + $0x78] sm:$0xff]  ;;  %v70_v42 = vld [vmem:[#allocation4 + $0x88] sm:$0xff]  ;;  %vm418_vm7 = vcmp.ge.s32.totalorder %v417_v16, 21  ;;  %vm419_vm8 = vcmp.lt.s32.totalorder %v417_v16, 26 }
  0x30   :  { %469 = vmatprep.subr.mxu0 %v619_v0  ;;  %v541_v38 = vpack.c.bf16 %v68_v37, %v67_v36  ;;  %v229_v44 = vrot.slane %v70_v42, %v228_v41  ;;  %v240_v46 = vrot.slane %v70_v42, %v239_v43  ;;  %v251_v59 = vrot.slane %v70_v42, %v250_v56  ;;  %vm420_vm9 = vmand %vm418_vm7, %vm419_vm8 }
  0x31   :  { %524 = vmatpush3.bf16.msra.mxu1 %v523_v18  ;;  %v256_v61 = vrot.slane %v70_v42, %v255_v57  ;;  %v413_v9 = vrot.slane %v70_v42, %v412_v8 }
  0x32   :  { %467 = vmatmul.mubr.msk.f32.vlgmr.msra.gmra.mrb[2].mxu0 %vm71_vm4, %v45_v11  ;;  %525 = vmatprep.subr.bf16.mxu1 %v620_v1 }
  0x33   :  { %471 = vmatprep.mubr.msk.f32.mxu0 %vm621_vm0, %v619_v0  ;;  %470 = vmatpush3.msk.msra.mxu0 %vm266_vm5, %v69_v33 }
  0x35   :  { %527 = vmatpush3.bf16.msra.mxu1 %v526_v21 }
  0x36   :  { %528 = vmatprep.subr.bf16.mxu1 %v620_v1  ;;  %472 = vmatmul.mubr.msk.f32.vlgmr.msra.gmra.mrb[4].mxu0 %vm262_vm6, %v46_v34 }
  0x39   :  { %530 = vmatpush3.bf16.msra.mxu1 %v529_v24 }
  0x3a   :  { %531 = vmatprep.subr.bf16.mxu1 %v620_v1 }
  0x3d   :  { %533 = vmatpush3.bf16.msra.mxu1 %v532_v27 }
  0x3e   :  { %534 = vmatprep.subr.bf16.mxu1 %v620_v1 }
  0x41   :  { %536 = vmatpush3.bf16.msra.mxu1 %v535_v30 }
  0x42   :  { %537 = vmatprep.subr.bf16.mxu1 %v620_v1 }
  0x45   :  { %539 = vmatpush3.bf16.msra.mxu1 %v538_v35 }
  0x46   :  { %540 = vmatprep.subr.bf16.mxu1 %v620_v1 }
  0x49   :  { %542 = vmatpush3.bf16.msra.mxu1 %v541_v38 }
 0x101   :  { %v151_v45 = vpop.f32.mrb[0].mxu0 }
 0x102   :  { %v230_v47 = vadd.f32 %v229_v44, %v151_v45  ;;  %v153_v48 = vpop.f32.mrb[1].mxu0 }
 0x103   :  { %v241_v50 = vadd.f32 %v240_v46, %v153_v48 }
 0x104   :  { %v436_v49 = vmul.f32 -1.442695, %v230_v47 }
 0x105   :  { %v222_v51 = vpop.f32.mrb[2].mxu0  ;;  %v437_v53 = vmul.f32 -1.442695, %v241_v50 }
 0x106   :  { %553 = vpow2.f32 %v436_v49  ;;  %v468_v52 = vpop.f32.mrb[3].mxu0  ;;  %v252_v62 = vadd.f32 %v251_v59, %v222_v51 }
 0x107   :  { %555 = vpow2.f32 %v437_v53 }
 0x109   :  { %v336_v6 = vpop.f32.mrb[4].mxu0 }
 0x10a   :  { %v473_v7 = vpop.f32.mrb[5].mxu0 }
 0x110   :  { %v554_v54 = vpop.eup %553 }
 0x111   :  { %v234_v55 = vadd.f32 1.0, %v554_v54  ;;  %v556_v58 = vpop.eup %555 }
 0x112   :  { %v245_v60 = vadd.f32 1.0, %v556_v58 }
 0x113   :  { %557 = vrcp.f32 %v234_v55 }
 0x114   :  { %559 = vrcp.f32 %v245_v60 }
 0x11d   :  { %v558_v63 = vpop.eup %557 }
 0x11e   :  { %v257_v0 = vmul.f32 %v558_v63, %v256_v61  ;;  %v560_v2 = vpop.eup %559 }
 0x11f   :  { %v260_v3 = vsub.f32 1.0, %v560_v2 }
 0x120   :  { %v258_v1 = vadd.f32 %v257_v0, %v252_v62 }
 0x122   :  { %561 = vtanh.f32 %v258_v1 }
 0x12c   :  { %v562_v4 = vpop.eup %561 }
 0x12d   :  { %v261_v5 = vmul.f32 %v562_v4, %v260_v3 }
 0x12f   :  { %507 = vmatmul.mubr.f32.vlgmr.msra.gmra.mrb[0].mxu1 %v261_v5 }
 0x202   :  { %v406_v10 = vpop.f32.mrb[0].mxu1 }
 0x203   :  { %v407_v11 = vadd.f32 %v406_v10, %v336_v6  ;;  %v508_v12 = vpop.f32.mrb[1].mxu1 }
 0x205   :  { %v414_v13 = vadd.f32 %v413_v9, %v407_v11 }
 0x207   :  { %v415_v14 = vadd.f32 %v414_v13, %v261_v5 }
 0x209   :  { %v421_v15 = vmul.f32 1.442695, %v415_v14 }
 0x20b   :  { %563 = vpow2.f32 %v421_v15 }
 0x215   :  { %v564_v17 = vpop.eup %563 }
 0x216   :  { %v423_v18 = vsel %vm420_vm9, %v564_v17, %v415_v14 }
 0x217   :  { %424 = vst [vmem:[%s707_s4] sm:$0xff] %v423_v18 }
 0x218   :  { %429 = vsyncpa [#allocation3], 1 }
 0x219   :  { %430 = vsyncpa [#allocation5], 1 }

</bundles_post_ra>
